<compile_context>
chip_gen: v6e
topology: v6e:2x2x1
jax: 0.10.0
libtpu: 0.0.40
codegen_flags: <defaults>
</compile_context>

<pallas_src>
import functools

import jax
import jax.numpy as jnp
from jax.experimental import pallas as pl
from jax.experimental.pallas import tpu as pltpu


def _double_conv_kernel(mask_ref, x_ref, w1_ref, b1_ref, w2_ref, b2_ref, o_ref,
                        *, img_w, fused1, fused2):
    """Fused conv3x3+ReLU -> conv3x3+ReLU for one block of images.

    mask_ref: (9, L)  f32 0/1 boundary-validity mask per tap (L = imgs_per_blk*H*W)
    x_ref:    (Cin, L) bf16 images, channel-major, batch+spatial in the lane axis
    w1_ref:   fused path (C1, 9*Cin) bf16, columns ordered (tap, ci)
              per-tap path (9, C1, Cin) bf16
    b1_ref:   (C1, 1) f32
    w2_ref / b2_ref: same for conv2
    o_ref:    (C2, L) output dtype
    """
    L = x_ref.shape[-1]
    masks = mask_ref[...]                                   # (9, L) f32 {0,1}

    def tap_tile(x_f32, tap):
        # shifted[:, p] == x[:, p + s]; out-of-image neighbours (including the
        # circular wrap of the roll and any cross-image leakage) are zeroed by the
        # boundary mask. Returns the bf16 MXU operand tile.
        dh, dw = tap // 3, tap % 3
        s = (dh - 1) * img_w + (dw - 1)
        t = x_f32 if s == 0 else pltpu.roll(x_f32, (-s) % L, axis=1)
        if tap != 4:                                        # centre tap: mask == 1
            t = t * masks[tap:tap + 1, :]
        return t.astype(jnp.bfloat16)

    def conv3x3(x_f32, w_ref, b_ref, fused):
        if fused:
            # Small-C path: single MXU contraction with K = 9*Cin.
            stacked = jnp.concatenate([tap_tile(x_f32, t) for t in range(9)],
                                      axis=0)               # (9*Cin, L) bf16
            acc = jnp.dot(w_ref[...], stacked,
                          preferred_element_type=jnp.float32)
        else:
            # Large-C path: 9 accumulated partial matmuls; only one shifted tile
            # is live at a time (no 9x im2col materialization).
            acc = jnp.dot(w_ref[0], tap_tile(x_f32, 0),
                          preferred_element_type=jnp.float32)
            for t in range(1, 9):
                acc = acc + jnp.dot(w_ref[t], tap_tile(x_f32, t),
                                    preferred_element_type=jnp.float32)
        return jnp.maximum(acc + b_ref[...], 0.0)           # bias + ReLU in f32

    x = x_ref[...].astype(jnp.float32)                      # (Cin, L)
    y1 = conv3x3(x, w1_ref, b1_ref, fused1)                 # (C1, L) f32, on-chip
    y2 = conv3x3(y1, w2_ref, b2_ref, fused2)                # (C2, L) f32
    o_ref[...] = y2.astype(o_ref.dtype)                     # lane-dense store


def _build_masks(h, w, dtype=jnp.float32):
    """(9, H*W) 0/1 mask: mask[tap, y*W+x] == 1 iff that tap's neighbour is in-bounds."""
    ys, xs = jnp.meshgrid(jnp.arange(h), jnp.arange(w), indexing="ij")
    ys = ys.reshape(-1)
    xs = xs.reshape(-1)
    rows = []
    for tap in range(9):
        dh, dw = tap // 3, tap % 3
        m = ((ys + dh - 1 >= 0) & (ys + dh - 1 < h) &
             (xs + dw - 1 >= 0) & (xs + dw - 1 < w))
        rows.append(m)
    return jnp.stack(rows, axis=0).astype(dtype)


def _prep_weights(w_oihw, fused):
    cout, cin = w_oihw.shape[0], w_oihw.shape[1]
    if fused:
        # (Cout, 9*Cin), columns ordered (tap = kh*3+kw, ci) to match the
        # sublane-stacked tap tiles of the fused-K path.
        wm = jnp.transpose(w_oihw, (0, 2, 3, 1)).reshape(cout, 9 * cin)
    else:
        # (9, Cout, Cin): per-tap weight slabs for the accumulated-matmul path.
        wm = jnp.transpose(w_oihw, (2, 3, 0, 1)).reshape(9, cout, cin)
    return wm.astype(jnp.bfloat16)


def _pick_images_per_block(n, hw, lane_target):
    # Pack several images into one grid step's lane axis (amortizes per-step
    # overhead / MXU fill) but keep >= 2 grid steps when n >= 2 so both v7x
    # TensorCores get parallel work.
    ib = max(1, min(lane_target // hw, (n + 1) // 2))
    while n % ib != 0:
        ib -= 1
    return ib


def _vmem_limit_bytes(block_bytes, scratch_bytes):
    # Double-buffered pipeline blocks + in-kernel temporaries + compiler headroom,
    # clamped so it always fits v7x's 64 MiB per-TensorCore VMEM.
    est = 2 * block_bytes + scratch_bytes + (4 << 20)
    return int(min(max(est, 16 << 20), 48 << 20))


def double_conv(x_nchw, params, *, fused_k_max_cin=16, lane_target=1024):
    """Matches DoubleConv.forward semantics. Input/output in PyTorch NCHW (f32)."""
    w1, b1, w2, b2 = params
    n, cin, h, w = x_nchw.shape
    c1, c2 = w1.shape[0], w2.shape[0]
    hw = h * w

    ib = _pick_images_per_block(n, hw, lane_target)
    lb = ib * hw
    grid = (n // ib,)
    assert lb % 128 == 0 or ib == n, (
        "per-step lane width must be a multiple of 128 or cover the whole batch")

    # Channel-major layout with batch+spatial folded into the lane axis:
    # lane-dense DMA and stores; halo handled in-register by roll + boundary mask.
    x_flat = jnp.transpose(x_nchw, (1, 0, 2, 3)).reshape(cin, n * hw)
    x_flat = x_flat.astype(jnp.bfloat16)          # halve input HBM->VMEM traffic

    fused1 = cin < fused_k_max_cin
    fused2 = c1 < fused_k_max_cin
    w1m = _prep_weights(w1, fused1)
    w2m = _prep_weights(w2, fused2)
    b1c = b1.reshape(c1, 1).astype(jnp.float32)
    b2c = b2.reshape(c2, 1).astype(jnp.float32)
    masks = jnp.tile(_build_masks(h, w, jnp.float32), (1, ib))   # (9, lb)

    w1_block = tuple(w1m.shape)
    w2_block = tuple(w2m.shape)

    block_bytes = (masks.size * 4 + cin * lb * 2 + w1m.size * 2 + c1 * 4 +
                   w2m.size * 2 + c2 * 4 + c2 * lb * 4)
    scratch_bytes = (cin + 2 * c1 + c2) * lb * 4 + 9 * max(cin, c1) * lb * 2

    kernel = functools.partial(_double_conv_kernel, img_w=w,
                               fused1=fused1, fused2=fused2)

    out = pl.pallas_call(
        kernel,
        out_shape=jax.ShapeDtypeStruct((c2, n * hw), x_nchw.dtype),
        grid_spec=pltpu.PrefetchScalarGridSpec(
            num_scalar_prefetch=0,
            grid=grid,
            in_specs=[
                pl.BlockSpec((9, lb), lambda i: (0, 0)),               # boundary masks
                pl.BlockSpec((cin, lb), lambda i: (0, i)),             # images, step i
                pl.BlockSpec(w1_block, lambda i: (0,) * len(w1_block)),  # conv1 weights
                pl.BlockSpec((c1, 1), lambda i: (0, 0)),               # conv1 bias
                pl.BlockSpec(w2_block, lambda i: (0,) * len(w2_block)),  # conv2 weights
                pl.BlockSpec((c2, 1), lambda i: (0, 0)),               # conv2 bias
            ],
            out_specs=pl.BlockSpec((c2, lb), lambda i: (0, i)),
        ),
        compiler_params=pltpu.CompilerParams(
            dimension_semantics=("parallel",),
            vmem_limit_bytes=_vmem_limit_bytes(block_bytes, scratch_bytes),
        ),
    )(masks, x_flat, w1m, b1c, w2m, b2c)

    return jnp.transpose(out.reshape(c2, n, h, w), (1, 0, 2, 3))


def init_params(key, in_channels, out_channels, dtype=jnp.float32):
    k1, k2, k3, k4 = jax.random.split(key, 4)
    fan_in1 = in_channels * 9
    fan_in2 = out_channels * 9
    w1 = jax.random.uniform(k1, (out_channels, in_channels, 3, 3), dtype,
                            -1.0 / jnp.sqrt(fan_in1), 1.0 / jnp.sqrt(fan_in1))
    b1 = jax.random.uniform(k2, (out_channels,), dtype,
                            -1.0 / jnp.sqrt(fan_in1), 1.0 / jnp.sqrt(fan_in1))
    w2 = jax.random.uniform(k3, (out_channels, out_channels, 3, 3), dtype,
                            -1.0 / jnp.sqrt(fan_in2), 1.0 / jnp.sqrt(fan_in2))
    b2 = jax.random.uniform(k4, (out_channels,), dtype,
                            -1.0 / jnp.sqrt(fan_in2), 1.0 / jnp.sqrt(fan_in2))
    return (w1, b1, w2, b2)


def _reference(x_nchw, params):
    """Plain-JAX reference with the same numerics: bf16 operands, f32 accumulation."""
    w1, b1, w2, b2 = params
    dn = jax.lax.conv_dimension_numbers(x_nchw.shape, w1.shape,
                                        ("NCHW", "OIHW", "NCHW"))

    def conv(x, wgt):
        return jax.lax.conv_general_dilated(
            x.astype(jnp.bfloat16), wgt.astype(jnp.bfloat16), (1, 1), "SAME",
            dimension_numbers=dn, preferred_element_type=jnp.float32)

    y = jnp.maximum(conv(x_nchw, w1) + b1[None, :, None, None], 0.0)
    y = jnp.maximum(conv(y, w2) + b2[None, :, None, None], 0.0)
    return y


if __name__ == "__main__":
    key = jax.random.PRNGKey(0)

    # Config 1 exercises the fused-K (small-C) path for both stages;
    # config 2 exercises the per-tap accumulated-matmul path for stage 2.
    for (n, c_in, c_out, h, w) in ((2, 4, 8, 16, 16), (2, 4, 32, 16, 16)):
        kx, kp, key = jax.random.split(key, 3)
        x = jax.random.normal(kx, (n, c_in, h, w), dtype=jnp.float32)
        params = init_params(kp, c_in, c_out)

        out = jax.block_until_ready(jax.jit(double_conv)(x, params))
        ref = _reference(x, params)

        assert out.shape == (n, c_out, h, w), out.shape
        max_err = float(jnp.max(jnp.abs(out - ref)))
        # bf16 MXU operands (f32 accumulation): tolerance relaxed vs. pure f32.
        assert max_err < 1e-2, max_err

    print("KERNEL_OK")
</pallas_src>

<mosaic_0001>
module attributes {stable_mosaic.version = 11 : i64} {
  func.func @_double_conv_kernel(%arg0: i32, %arg1: memref<9x256xf32, #tpu.memory_space<vmem>>, %arg2: memref<4x256xbf16, #tpu.memory_space<vmem>>, %arg3: memref<8x36xbf16, #tpu.memory_space<vmem>>, %arg4: memref<8x1xf32, #tpu.memory_space<vmem>>, %arg5: memref<8x72xbf16, #tpu.memory_space<vmem>>, %arg6: memref<8x1xf32, #tpu.memory_space<vmem>>, %arg7: memref<8x256xf32, #tpu.memory_space<vmem>>) attributes {dimension_semantics = [#tpu.dimension_semantics<parallel>], iteration_bounds = array<i64: 2>, scalar_prefetch = 0 : i64, scratch_operands = 0 : i64, tpu.core_type = #tpu.core_type<tc>, window_params = [{pipeline_mode = #tpu.pipeline_mode<synchronous>, transform_indices = @transform_0, window_bounds = array<i64: 9, 256>}, {transform_indices = @transform_1, window_bounds = array<i64: 4, 256>}, {pipeline_mode = #tpu.pipeline_mode<synchronous>, transform_indices = @transform_2, window_bounds = array<i64: 8, 36>}, {pipeline_mode = #tpu.pipeline_mode<synchronous>, transform_indices = @transform_3, window_bounds = array<i64: 8, 1>}, {pipeline_mode = #tpu.pipeline_mode<synchronous>, transform_indices = @transform_4, window_bounds = array<i64: 8, 72>}, {pipeline_mode = #tpu.pipeline_mode<synchronous>, transform_indices = @transform_5, window_bounds = array<i64: 8, 1>}, {transform_indices = @transform_6, window_bounds = array<i64: 8, 256>}]} {
    %c0 = arith.constant 0 : index
    %c0_0 = arith.constant 0 : index
    %0 = vector.load %arg1[%c0, %c0_0] : memref<9x256xf32, #tpu.memory_space<vmem>>, vector<9x256xf32>
    %c0_1 = arith.constant 0 : index
    %c0_2 = arith.constant 0 : index
    %1 = vector.load %arg2[%c0_1, %c0_2] : memref<4x256xbf16, #tpu.memory_space<vmem>>, vector<4x256xbf16>
    %2 = arith.extf %1 : vector<4x256xbf16> to vector<4x256xf32>
    %c17_i32 = arith.constant 17 : i32
    %3 = tpu.dynamic_rotate %2 by %c17_i32 dim 1 : vector<4x256xf32>, i32 -> vector<4x256xf32>
    %4 = vector.extract_strided_slice %0 {offsets = [0, 0], sizes = [1, 256], strides = [1, 1]} : vector<9x256xf32> to vector<1x256xf32>
    %5 = vector.broadcast %4 : vector<1x256xf32> to vector<4x256xf32>
    %6 = arith.mulf %3, %5 : vector<4x256xf32>
    %7 = arith.truncf %6 : vector<4x256xf32> to vector<4x256xbf16>
    %c16_i32 = arith.constant 16 : i32
    %8 = tpu.dynamic_rotate %2 by %c16_i32 dim 1 : vector<4x256xf32>, i32 -> vector<4x256xf32>
    %9 = vector.extract_strided_slice %0 {offsets = [1, 0], sizes = [1, 256], strides = [1, 1]} : vector<9x256xf32> to vector<1x256xf32>
    %10 = vector.broadcast %9 : vector<1x256xf32> to vector<4x256xf32>
    %11 = arith.mulf %8, %10 : vector<4x256xf32>
    %12 = arith.truncf %11 : vector<4x256xf32> to vector<4x256xbf16>
    %c15_i32 = arith.constant 15 : i32
    %13 = tpu.dynamic_rotate %2 by %c15_i32 dim 1 : vector<4x256xf32>, i32 -> vector<4x256xf32>
    %14 = vector.extract_strided_slice %0 {offsets = [2, 0], sizes = [1, 256], strides = [1, 1]} : vector<9x256xf32> to vector<1x256xf32>
    %15 = vector.broadcast %14 : vector<1x256xf32> to vector<4x256xf32>
    %16 = arith.mulf %13, %15 : vector<4x256xf32>
    %17 = arith.truncf %16 : vector<4x256xf32> to vector<4x256xbf16>
    %c1_i32 = arith.constant 1 : i32
    %18 = tpu.dynamic_rotate %2 by %c1_i32 dim 1 : vector<4x256xf32>, i32 -> vector<4x256xf32>
    %19 = vector.extract_strided_slice %0 {offsets = [3, 0], sizes = [1, 256], strides = [1, 1]} : vector<9x256xf32> to vector<1x256xf32>
    %20 = vector.broadcast %19 : vector<1x256xf32> to vector<4x256xf32>
    %21 = arith.mulf %18, %20 : vector<4x256xf32>
    %22 = arith.truncf %21 : vector<4x256xf32> to vector<4x256xbf16>
    %23 = arith.truncf %2 : vector<4x256xf32> to vector<4x256xbf16>
    %c255_i32 = arith.constant 255 : i32
    %24 = tpu.dynamic_rotate %2 by %c255_i32 dim 1 : vector<4x256xf32>, i32 -> vector<4x256xf32>
    %25 = vector.extract_strided_slice %0 {offsets = [5, 0], sizes = [1, 256], strides = [1, 1]} : vector<9x256xf32> to vector<1x256xf32>
    %26 = vector.broadcast %25 : vector<1x256xf32> to vector<4x256xf32>
    %27 = arith.mulf %24, %26 : vector<4x256xf32>
    %28 = arith.truncf %27 : vector<4x256xf32> to vector<4x256xbf16>
    %c241_i32 = arith.constant 241 : i32
    %29 = tpu.dynamic_rotate %2 by %c241_i32 dim 1 : vector<4x256xf32>, i32 -> vector<4x256xf32>
    %30 = vector.extract_strided_slice %0 {offsets = [6, 0], sizes = [1, 256], strides = [1, 1]} : vector<9x256xf32> to vector<1x256xf32>
    %31 = vector.broadcast %30 : vector<1x256xf32> to vector<4x256xf32>
    %32 = arith.mulf %29, %31 : vector<4x256xf32>
    %33 = arith.truncf %32 : vector<4x256xf32> to vector<4x256xbf16>
    %c240_i32 = arith.constant 240 : i32
    %34 = tpu.dynamic_rotate %2 by %c240_i32 dim 1 : vector<4x256xf32>, i32 -> vector<4x256xf32>
    %35 = vector.extract_strided_slice %0 {offsets = [7, 0], sizes = [1, 256], strides = [1, 1]} : vector<9x256xf32> to vector<1x256xf32>
    %36 = vector.broadcast %35 : vector<1x256xf32> to vector<4x256xf32>
    %37 = arith.mulf %34, %36 : vector<4x256xf32>
    %38 = arith.truncf %37 : vector<4x256xf32> to vector<4x256xbf16>
    %c239_i32 = arith.constant 239 : i32
    %39 = tpu.dynamic_rotate %2 by %c239_i32 dim 1 : vector<4x256xf32>, i32 -> vector<4x256xf32>
    %40 = vector.extract_strided_slice %0 {offsets = [8, 0], sizes = [1, 256], strides = [1, 1]} : vector<9x256xf32> to vector<1x256xf32>
    %41 = vector.broadcast %40 : vector<1x256xf32> to vector<4x256xf32>
    %42 = arith.mulf %39, %41 : vector<4x256xf32>
    %43 = arith.truncf %42 : vector<4x256xf32> to vector<4x256xbf16>
    %44 = tpu.concatenate %7, %12, %17, %22, %23, %28, %33, %38, %43 in 0 : vector<4x256xbf16>, vector<4x256xbf16>, vector<4x256xbf16>, vector<4x256xbf16>, vector<4x256xbf16>, vector<4x256xbf16>, vector<4x256xbf16>, vector<4x256xbf16>, vector<4x256xbf16> -> vector<36x256xbf16>
    %c0_3 = arith.constant 0 : index
    %c0_4 = arith.constant 0 : index
    %45 = vector.load %arg3[%c0_3, %c0_4] : memref<8x36xbf16, #tpu.memory_space<vmem>>, vector<8x36xbf16>
    %cst = arith.constant dense<0.000000e+00> : vector<8x256xf32>
    %46 = tpu.matmul %45, %44, %cst {dimension_numbers = #tpu.dot_dimension_numbers<[1], [0], [0], [1], [0, 0, 1, 1], [], []>} : vector<8x36xbf16>, vector<36x256xbf16>, vector<8x256xf32> -> vector<8x256xf32>
    %c0_5 = arith.constant 0 : index
    %c0_6 = arith.constant 0 : index
    %47 = vector.load %arg4[%c0_5, %c0_6] : memref<8x1xf32, #tpu.memory_space<vmem>>, vector<8x1xf32>
    %48 = vector.broadcast %47 : vector<8x1xf32> to vector<8x256xf32>
    %49 = arith.addf %46, %48 : vector<8x256xf32>
    %cst_7 = arith.constant 0.000000e+00 : f32
    %50 = vector.broadcast %cst_7 : f32 to vector<8x256xf32>
    %51 = arith.maximumf %49, %50 : vector<8x256xf32>
    %c17_i32_8 = arith.constant 17 : i32
    %52 = tpu.dynamic_rotate %51 by %c17_i32_8 dim 1 : vector<8x256xf32>, i32 -> vector<8x256xf32>
    %53 = vector.extract_strided_slice %0 {offsets = [0, 0], sizes = [1, 256], strides = [1, 1]} : vector<9x256xf32> to vector<1x256xf32>
    %54 = vector.broadcast %53 : vector<1x256xf32> to vector<8x256xf32>
    %55 = arith.mulf %52, %54 : vector<8x256xf32>
    %56 = arith.truncf %55 : vector<8x256xf32> to vector<8x256xbf16>
    %c16_i32_9 = arith.constant 16 : i32
    %57 = tpu.dynamic_rotate %51 by %c16_i32_9 dim 1 : vector<8x256xf32>, i32 -> vector<8x256xf32>
    %58 = vector.extract_strided_slice %0 {offsets = [1, 0], sizes = [1, 256], strides = [1, 1]} : vector<9x256xf32> to vector<1x256xf32>
    %59 = vector.broadcast %58 : vector<1x256xf32> to vector<8x256xf32>
    %60 = arith.mulf %57, %59 : vector<8x256xf32>
    %61 = arith.truncf %60 : vector<8x256xf32> to vector<8x256xbf16>
    %c15_i32_10 = arith.constant 15 : i32
    %62 = tpu.dynamic_rotate %51 by %c15_i32_10 dim 1 : vector<8x256xf32>, i32 -> vector<8x256xf32>
    %63 = vector.extract_strided_slice %0 {offsets = [2, 0], sizes = [1, 256], strides = [1, 1]} : vector<9x256xf32> to vector<1x256xf32>
    %64 = vector.broadcast %63 : vector<1x256xf32> to vector<8x256xf32>
    %65 = arith.mulf %62, %64 : vector<8x256xf32>
    %66 = arith.truncf %65 : vector<8x256xf32> to vector<8x256xbf16>
    %c1_i32_11 = arith.constant 1 : i32
    %67 = tpu.dynamic_rotate %51 by %c1_i32_11 dim 1 : vector<8x256xf32>, i32 -> vector<8x256xf32>
    %68 = vector.extract_strided_slice %0 {offsets = [3, 0], sizes = [1, 256], strides = [1, 1]} : vector<9x256xf32> to vector<1x256xf32>
    %69 = vector.broadcast %68 : vector<1x256xf32> to vector<8x256xf32>
    %70 = arith.mulf %67, %69 : vector<8x256xf32>
    %71 = arith.truncf %70 : vector<8x256xf32> to vector<8x256xbf16>
    %72 = arith.truncf %51 : vector<8x256xf32> to vector<8x256xbf16>
    %c255_i32_12 = arith.constant 255 : i32
    %73 = tpu.dynamic_rotate %51 by %c255_i32_12 dim 1 : vector<8x256xf32>, i32 -> vector<8x256xf32>
    %74 = vector.extract_strided_slice %0 {offsets = [5, 0], sizes = [1, 256], strides = [1, 1]} : vector<9x256xf32> to vector<1x256xf32>
    %75 = vector.broadcast %74 : vector<1x256xf32> to vector<8x256xf32>
    %76 = arith.mulf %73, %75 : vector<8x256xf32>
    %77 = arith.truncf %76 : vector<8x256xf32> to vector<8x256xbf16>
    %c241_i32_13 = arith.constant 241 : i32
    %78 = tpu.dynamic_rotate %51 by %c241_i32_13 dim 1 : vector<8x256xf32>, i32 -> vector<8x256xf32>
    %79 = vector.extract_strided_slice %0 {offsets = [6, 0], sizes = [1, 256], strides = [1, 1]} : vector<9x256xf32> to vector<1x256xf32>
    %80 = vector.broadcast %79 : vector<1x256xf32> to vector<8x256xf32>
    %81 = arith.mulf %78, %80 : vector<8x256xf32>
    %82 = arith.truncf %81 : vector<8x256xf32> to vector<8x256xbf16>
    %c240_i32_14 = arith.constant 240 : i32
    %83 = tpu.dynamic_rotate %51 by %c240_i32_14 dim 1 : vector<8x256xf32>, i32 -> vector<8x256xf32>
    %84 = vector.extract_strided_slice %0 {offsets = [7, 0], sizes = [1, 256], strides = [1, 1]} : vector<9x256xf32> to vector<1x256xf32>
    %85 = vector.broadcast %84 : vector<1x256xf32> to vector<8x256xf32>
    %86 = arith.mulf %83, %85 : vector<8x256xf32>
    %87 = arith.truncf %86 : vector<8x256xf32> to vector<8x256xbf16>
    %c239_i32_15 = arith.constant 239 : i32
    %88 = tpu.dynamic_rotate %51 by %c239_i32_15 dim 1 : vector<8x256xf32>, i32 -> vector<8x256xf32>
    %89 = vector.extract_strided_slice %0 {offsets = [8, 0], sizes = [1, 256], strides = [1, 1]} : vector<9x256xf32> to vector<1x256xf32>
    %90 = vector.broadcast %89 : vector<1x256xf32> to vector<8x256xf32>
    %91 = arith.mulf %88, %90 : vector<8x256xf32>
    %92 = arith.truncf %91 : vector<8x256xf32> to vector<8x256xbf16>
    %93 = tpu.concatenate %56, %61, %66, %71, %72, %77, %82, %87, %92 in 0 : vector<8x256xbf16>, vector<8x256xbf16>, vector<8x256xbf16>, vector<8x256xbf16>, vector<8x256xbf16>, vector<8x256xbf16>, vector<8x256xbf16>, vector<8x256xbf16>, vector<8x256xbf16> -> vector<72x256xbf16>
    %c0_16 = arith.constant 0 : index
    %c0_17 = arith.constant 0 : index
    %94 = vector.load %arg5[%c0_16, %c0_17] : memref<8x72xbf16, #tpu.memory_space<vmem>>, vector<8x72xbf16>
    %cst_18 = arith.constant dense<0.000000e+00> : vector<8x256xf32>
    %95 = tpu.matmul %94, %93, %cst_18 {dimension_numbers = #tpu.dot_dimension_numbers<[1], [0], [0], [1], [0, 0, 1, 1], [], []>} : vector<8x72xbf16>, vector<72x256xbf16>, vector<8x256xf32> -> vector<8x256xf32>
    %c0_19 = arith.constant 0 : index
    %c0_20 = arith.constant 0 : index
    %96 = vector.load %arg6[%c0_19, %c0_20] : memref<8x1xf32, #tpu.memory_space<vmem>>, vector<8x1xf32>
    %97 = vector.broadcast %96 : vector<8x1xf32> to vector<8x256xf32>
    %98 = arith.addf %95, %97 : vector<8x256xf32>
    %cst_21 = arith.constant 0.000000e+00 : f32
    %99 = vector.broadcast %cst_21 : f32 to vector<8x256xf32>
    %100 = arith.maximumf %98, %99 : vector<8x256xf32>
    %c0_22 = arith.constant 0 : index
    %c0_23 = arith.constant 0 : index
    %101 = vector.load %arg7[%c0_22, %c0_23] : memref<8x256xf32, #tpu.memory_space<vmem>>, vector<8x256xf32>
    tpu.vector_store %arg7[%c0_22, %c0_23], %100 {strides = array<i32>} : memref<8x256xf32, #tpu.memory_space<vmem>>, vector<8x256xf32>,
    return
  }
  func.func @transform_0(%arg0: i32) -> (i32, i32) {
    %c0_i32 = arith.constant 0 : i32
    %c0_i32_0 = arith.constant 0 : i32
    %c0_i32_1 = arith.constant 0 : i32
    return %c0_i32, %c0_i32_0 : i32, i32
  }
  func.func @transform_1(%arg0: i32) -> (i32, i32) {
    %c0_i32 = arith.constant 0 : i32
    %c0_i32_0 = arith.constant 0 : i32
    return %c0_i32, %arg0 : i32, i32
  }
  func.func @transform_2(%arg0: i32) -> (i32, i32) {
    %c0_i32 = arith.constant 0 : i32
    %c0_i32_0 = arith.constant 0 : i32
    %c0_i32_1 = arith.constant 0 : i32
    return %c0_i32, %c0_i32_0 : i32, i32
  }
  func.func @transform_3(%arg0: i32) -> (i32, i32) {
    %c0_i32 = arith.constant 0 : i32
    %c0_i32_0 = arith.constant 0 : i32
    %c0_i32_1 = arith.constant 0 : i32
    return %c0_i32, %c0_i32_0 : i32, i32
  }
  func.func @transform_4(%arg0: i32) -> (i32, i32) {
    %c0_i32 = arith.constant 0 : i32
    %c0_i32_0 = arith.constant 0 : i32
    %c0_i32_1 = arith.constant 0 : i32
    return %c0_i32, %c0_i32_0 : i32, i32
  }
  func.func @transform_5(%arg0: i32) -> (i32, i32) {
    %c0_i32 = arith.constant 0 : i32
    %c0_i32_0 = arith.constant 0 : i32
    %c0_i32_1 = arith.constant 0 : i32
    return %c0_i32, %c0_i32_0 : i32, i32
  }
  func.func @transform_6(%arg0: i32) -> (i32, i32) {
    %c0_i32 = arith.constant 0 : i32
    %c0_i32_0 = arith.constant 0 : i32
    return %c0_i32, %arg0 : i32, i32
  }
}

</mosaic_0001>

<bundles_post_ra>
// kernel: double_conv.1
= control target key start
LH: loop header
LB: loop body
LE: loop exit
PB: predicated region body
PF: predicated region fallthrough
CT: control target
= control target key end

     0   :  { %s924_s21 = smov 0   ;;  %s1198_s0 = inlined_call_operand.vmem [shape: f32[9,256], index: 0, kind: input, shape index: {}]   ;;  %s1199_s1 = inlined_call_operand.vmem [shape: bf16[4,512], index: 1, kind: input, shape index: {}]   ;;  %s1200_s2 = inlined_call_operand.vmem [shape: bf16[8,36], index: 2, kind: input, shape index: {}]   ;;  %s1201_s3 = inlined_call_operand.vmem [shape: f32[8,1], index: 3, kind: input, shape index: {}]   ;;  %s1202_s4 = inlined_call_operand.vmem [shape: bf16[8,72], index: 4, kind: input, shape index: {}]   ;;  %s1203_s5 = inlined_call_operand.vmem [shape: f32[8,1], index: 5, kind: input, shape index: {}]   ;;  %s1204_s6 = inlined_call_operand.vmem [shape: f32[8,512], index: 6, kind: output, shape index: {}]  }
   0x1 LB: > { %s795_s22 = sadd.s32 4294967295, %s877_s21   ;;  %p799_p0 = scmp.ge.s32.totalorder %s877_s21, 1  ;;  %s877_s21 = sphi %s924_s21, %s16_s21  }
   0x2   : > { %p213_p1 = scmp.lt.s32.totalorder %s877_s21, 3 }
   0x4   : > { %p214_p2 = pnand %p799_p0, %p213_p1 }
   0x5   : > { %s800_s23 = sshll.u32 (!%p214_p2), %s795_s22, 1  ;;  %s879_s28 = smov (!%p214_p2), 111  }
   0x6   : > { %217 = sbr.rel (%p214_p2) target bundleno = 721 (0x2d1), region = 44  ;;  %p244_p3 = scmp.lt.s32.totalorder (!%p214_p2), %s800_s23, 3 }
   0x7   : > { %s880_s29 = smov (!%p214_p2), 127   ;;  %s881_s30 = smov (!%p214_p2), 112  }
   0x8   : > { %s882_s7 = smov (!%p214_p2), 113   ;;  %s883_s8 = smov (!%p214_p2), 15  }
   0x9   : > { %s884_s9 = smov (!%p214_p2), 16   ;;  %s885_s10 = smov (!%p214_p2), 1  }
   0xa   : > { %s886_s11 = smov (!%p214_p2), 17  }
   0xb   : > { %s1206_s23 = smov (!%p244_p3, %s800_s23), 3  ;;  %v887_v4 = vmov 0   ;;  %v488_v5 = vld [vmem:[%s1201_s3] sm:$0xff]  ;;  %v269_v6 = vlaneseq  ;;  %v888_v8 = vmov 1983009808   ;;  %v257_v13 = vld [vmem:[%s1198_s0 + $0x8] sm:$0xff] }
   0xc   : > { %s801_s24 = sshll.u32 %s1206_s23, 1  ;;  %536 = vmatprep.mubr.bf16.mxu0 %v887_v4  ;;  %870 = vset.pattern.permute.xlu0 %v887_v4  ;;  %v433_v9 = vunpack.c.l.s4 %v888_v8  ;;  %v256_v12 = vld [vmem:[%s1198_s0] sm:$0xff]  ;;  %vm452_vm4 = vcmask 1041408   ;;  %v998_v37 = vld [vmem:[%s1198_s0 + $0x18] ss:$0 sm:$0xff]  ;;  %vm459_vm9 = vcmask 1043456  }
   0xd   : > { %s247_s27 = scalar_lea.vmem %s1199_s1, %s801_s24  ;;  %726 = vmatprep.mubr.bf16.mxu1 %v887_v4  ;;  %v952_v7 = vshrl.u32 %v269_v6, 7  ;;  %v954_v10 = vand.u32 127, %v269_v6  ;;  %v1003_v38 = vld [vmem:[%s1198_s0 + $0x10] ss:$0 sm:$0xff]  ;;  %vm464_vm10 = vcmask 1045504   ;;  %vm494_vm11 = vcmask 293888  }
   0xe   : > { %v938_v0 = vld [vmem:[%s247_s27] sm:$0xf]  ;;  %v434_v15 = vunpack.c.0.s8 %v433_v9  ;;  %vm684_vm12 = vcmask 588800  }
   0xf   : > { %v261_v1 = vunpack.c.l.bf16 %v938_v0  ;;  %v352_v11 = vsub.s32 5, %v952_v7  ;;  %v371_v14 = vsub.s32 6, %v952_v7  ;;  %v314_v16 = vsub.s32 2, %v952_v7 }
  0x10   : > { %v390_v17 = vsub.s32 7, %v952_v7  ;;  %vm347_vm0 = vcmp.lt.s32.totalorder %v954_v10, 127  ;;  %vm404_vm1 = vcmp.lt.s32.totalorder %v954_v10, 111  ;;  %v295_v18 = vsub.s32 1, %v952_v7 }
  0x11   : > { %v263_v2 = vcombine.high %v261_v1, %v261_v1  ;;  %v969_v19 = vrot.slane %v256_v12, %v352_v11  ;;  %v971_v20 = vrot.slane %v257_v13, %v352_v11  ;;  %vm385_vm2 = vcmp.lt.s32.totalorder %v954_v10, 112 }
  0x12   : > { %vm366_vm3 = vcmp.lt.s32.totalorder %v954_v10, 113  ;;  %v975_v21 = vrot.slane %v256_v12, %v371_v14  ;;  %v977_v22 = vrot.slane %v257_v13, %v371_v14  ;;  %v276_v23 = vsub.s32 0, %v952_v7 }
  0x13   : > { %v840_v3 = vpack.i.bf16 %v263_v2, %v261_v1  ;;  %v437_v24 = vsub.s32 %v434_v15, %v952_v7  ;;  %v981_v25 = vrot.slane %v256_v12, %v314_v16  ;;  %v983_v26 = vrot.slane %v257_v13, %v314_v16 }
  0x14   : > { %v985_v27 = vrot.slane %v257_v13, %v390_v17  ;;  %vm309_vm5 = vcmp.lt.s32.totalorder %v954_v10, 15  ;;  %vm290_vm6 = vcmp.lt.s32.totalorder %v954_v10, 16  ;;  %v989_v30 = vrot.slane %v256_v12, %v295_v18 }
  0x15   : > { %841 = vrot.lane.b32.xlu1 %v840_v3, %s879_s28  ;;  %831 = vrot.lane.b32.xlu0 %v840_v3, %s880_s29  ;;  %v991_v31 = vrot.slane %v257_v13, %v295_v18  ;;  %v993_v32 = vrot.slane %v256_v12, %v390_v17  ;;  %v1005_v39 = vrot.slane %v256_v12, %v276_v23  ;;  %v333_v42 = vsub.s32 3, %v952_v7 }
  0x16   : > { %v1007_v40 = vrot.slane %v257_v13, %v276_v23  ;;  %v1010_v41 = vrot.slane %v938_v0, %v437_v24  ;;  %vm328_vm7 = vcmp.lt.s32.totalorder %v954_v10, 1  ;;  %vm271_vm8 = vcmp.lt.s32.totalorder %v954_v10, 17 }
  0x17   : > { %v1029_v60 = vrot.slane %v257_v13, %v333_v42  ;;  %v1035_v0 = vrot.slane %v256_v12, %v333_v42 }
  0x18   : > { %v439_v59 = vcombine.high %v1010_v41, %v1010_v41 }
  0x19   : > { %846 = vrot.lane.b32.xlu1 %v840_v3, %s881_s30  ;;  %836 = vrot.lane.b32.xlu0 %v840_v3, %s882_s7 }
  0x1d   : > { %856 = vrot.lane.b32.xlu1 %v840_v3, %s883_s8  ;;  %851 = vrot.lane.b32.xlu0 %v840_v3, %s884_s9 }
  0x21   : > { %866 = vrot.lane.b32.xlu1 %v840_v3, %s885_s10  ;;  %861 = vrot.lane.b32.xlu0 %v840_v3, %s886_s11 }
  0x25   : > { %491 = vperm.xlu0 %870, %v488_v5  }
  0x87   : > { %v842_v28 = vpop.permute.xlu1 %841  ;;  %v832_v29 = vpop.permute.xlu0 %831 }
  0x88   : > { %v844_v33 = vunpack.i.h.bf16 %v842_v28  ;;  %v843_v34 = vunpack.i.l.bf16 %v842_v28  ;;  %v834_v35 = vunpack.i.h.bf16 %v832_v29  ;;  %v833_v36 = vunpack.i.l.bf16 %v832_v29 }
  0x8a   : > { %v348_v43 = vsel %vm347_vm0, %v833_v36, %v834_v35  ;;  %v349_v44 = vsel %vm347_vm0, %v834_v35, %v833_v36  ;;  %v406_v45 = vsel %vm404_vm1, %v844_v33, %v843_v34  ;;  %v405_v46 = vsel %vm404_vm1, %v843_v34, %v844_v33 }
  0x8b   : > { %v358_v47 = vmul.f32 %v969_v19, %v348_v43  ;;  %v359_v48 = vmul.f32 %v971_v20, %v349_v44  ;;  %v847_v49 = vpop.permute.xlu1 %846  ;;  %v837_v50 = vpop.permute.xlu0 %836  ;;  %v416_v51 = vmul.f32 %v998_v37, %v406_v45  ;;  %v415_v52 = vmul.f32 %v1003_v38, %v405_v46 }
  0x8c   : > { %v849_v53 = vunpack.i.h.bf16 %v847_v49  ;;  %v848_v54 = vunpack.i.l.bf16 %v847_v49  ;;  %v839_v55 = vunpack.i.h.bf16 %v837_v50  ;;  %v838_v56 = vunpack.i.l.bf16 %v837_v50 }
  0x8d   : > { %v418_v57 = vpack.c.bf16 %v416_v51, %v416_v51  ;;  %v417_v58 = vpack.c.bf16 %v415_v52, %v415_v52  ;;  %v360_v61 = vpack.c.bf16 %v358_v47, %v358_v47  ;;  %v361_v1 = vpack.c.bf16 %v359_v48, %v359_v48 }
  0x8e   : > { %v367_v62 = vsel %vm366_vm3, %v838_v56, %v839_v55  ;;  %v368_v63 = vsel %vm366_vm3, %v839_v55, %v838_v56  ;;  %v386_v2 = vsel %vm385_vm2, %v848_v54, %v849_v53  ;;  %v387_v12 = vsel %vm385_vm2, %v849_v53, %v848_v54 }
  0x8f   : > { %v377_v3 = vmul.f32 %v975_v21, %v367_v62  ;;  %v378_v4 = vmul.f32 %v977_v22, %v368_v63  ;;  %v857_v5 = vpop.permute.xlu1 %856  ;;  %806 = vmatprep.subr.msk.bf16.mxu0 %vm452_vm4, %v418_v57  ;;  %v852_v6 = vpop.permute.xlu0 %851  ;;  %v499_v15 = vsel %vm452_vm4, %v417_v58, 0  ;;  %v442_v24 = vrot.slane %v360_v61, 6 }
  0x90   : > { %v859_v7 = vunpack.i.h.bf16 %v857_v5  ;;  %v858_v8 = vunpack.i.l.bf16 %v857_v5  ;;  %v854_v9 = vunpack.i.h.bf16 %v852_v6  ;;  %v853_v11 = vunpack.i.l.bf16 %v852_v6  ;;  %515 = vmatpush1.bf16.msra.mxu0 %v499_v15 }
  0x91   : > { %v379_v13 = vpack.c.bf16 %v377_v3, %v377_v3  ;;  %v380_v14 = vpack.c.bf16 %v378_v4, %v378_v4  ;;  %v443_v28 = vrot.slane %v361_v1, 6  ;;  %v397_v48 = vmul.f32 %v985_v27, %v387_v12 }
  0x92   : > { %v310_v16 = vsel %vm309_vm5, %v858_v8, %v859_v7  ;;  %v311_v17 = vsel %vm309_vm5, %v859_v7, %v858_v8  ;;  %v291_v18 = vsel %vm290_vm6, %v853_v11, %v854_v9  ;;  %v292_v23 = vsel %vm290_vm6, %v854_v9, %v853_v11 }
  0x93   : > { %v320_v29 = vmul.f32 %v981_v25, %v311_v17  ;;  %v321_v33 = vmul.f32 %v983_v26, %v310_v16  ;;  %v867_v34 = vpop.permute.xlu1 %866  ;;  %v862_v35 = vpop.permute.xlu0 %861  ;;  %v301_v36 = vmul.f32 %v989_v30, %v292_v23  ;;  %v302_v42 = vmul.f32 %v991_v31, %v291_v18 }
  0x94   : > { %v869_v43 = vunpack.i.h.bf16 %v867_v34  ;;  %v868_v44 = vunpack.i.l.bf16 %v867_v34  ;;  %v446_v45 = vrot.slane %v379_v13, 4  ;;  %v864_v46 = vunpack.i.h.bf16 %v862_v35 }
  0x95   : > { %v863_v47 = vunpack.i.l.bf16 %v862_v35  ;;  %v447_v49 = vrot.slane %v380_v14, 4  ;;  %v322_v50 = vpack.c.bf16 %v320_v29, %v320_v29  ;;  %v303_v51 = vpack.c.bf16 %v301_v36, %v301_v36 }
  0x96   : > { %v304_v52 = vpack.c.bf16 %v302_v42, %v302_v42  ;;  %v323_v53 = vpack.c.bf16 %v321_v33, %v321_v33  ;;  %v329_v54 = vsel %vm328_vm7, %v868_v44, %v869_v43  ;;  %v330_v58 = vsel %vm328_vm7, %v869_v43, %v868_v44  ;;  %v487_v42 = vld [vmem:[%s1200_s2] sm:$0xf] }
  0x97   : > { %v272_v55 = vsel %vm271_vm8, %v863_v47, %v864_v46  ;;  %v273_v56 = vsel %vm271_vm8, %v864_v46, %v863_v47  ;;  %v421_v57 = vrot.slane %v303_v51, 6  ;;  %v399_v1 = vpack.c.bf16 %v397_v48, %v397_v48 }
  0x98   : > { %v282_v61 = vmul.f32 %v1005_v39, %v273_v56  ;;  %v283_v62 = vmul.f32 %v1007_v40, %v272_v55  ;;  %v422_v63 = vrot.slane %v304_v52, 6  ;;  %v476_v3 = vsel %vm452_vm4, %v439_v59, %v443_v28  ;;  %v678_v52 = vld [vmem:[%s1203_s5] sm:$0xff] }
  0x99   : > { %v396_v4 = vmul.f32 %v993_v32, %v386_v2  ;;  %v480_v7 = vsel %vm459_vm9, %v476_v3, %v447_v49  ;;  %v473_v8 = vsel %vm452_vm4, %v1010_v41, %v442_v24  ;;  %v451_v9 = vrot.slane %v399_v1, 2 }
  0x9a   : > { %v284_v5 = vpack.c.bf16 %v282_v61, %v282_v61  ;;  %v285_v6 = vpack.c.bf16 %v283_v62, %v283_v62  ;;  %v340_v12 = vmul.f32 %v1029_v60, %v329_v54  ;;  %v339_v13 = vmul.f32 %v1035_v0, %v330_v58 }
  0x9b   : > { %v398_v11 = vpack.c.bf16 %v396_v4, %v396_v4  ;;  %v426_v14 = vrot.slane %v323_v53, 4  ;;  %v478_v15 = vsel %vm459_vm9, %v473_v8, %v446_v45  ;;  %v425_v16 = vrot.slane %v322_v50, 4 }
  0x9c   : > { %v458_v59 = vsel %vm452_vm4, %v285_v6, %v422_v63  ;;  %v455_v2 = vsel %vm452_vm4, %v284_v5, %v421_v57  ;;  %v485_v17 = vsel %vm464_vm10, %v480_v7, %v451_v9  ;;  %v342_v23 = vpack.c.bf16 %v340_v12, %v340_v12 }
  0x9d   : > { %v450_v18 = vrot.slane %v398_v11, 2  ;;  %516 = vmatprep.subr.bf16.mxu0 %v485_v17  ;;  %v463_v41 = vsel %vm459_vm9, %v458_v59, %v426_v14  ;;  %v341_v24 = vpack.c.bf16 %v339_v13, %v339_v13  ;;  %v461_v33 = vsel %vm459_vm9, %v455_v2, %v425_v16 }
  0x9e   : > { %v430_v29 = vrot.slane %v342_v23, 2 }
  0x9f   : > { %v482_v28 = vsel %vm464_vm10, %v478_v15, %v450_v18  ;;  %v429_v34 = vrot.slane %v341_v24, 2 }
  0xa0   : > { %517 = vmatpush1.bf16.msra.mxu0 %v482_v28  ;;  %v469_v35 = vsel %vm464_vm10, %v463_v41, %v430_v29  ;;  %v492_v43 = vpop.permute.xlu0 %491 }
  0xa1   : > { %518 = vmatprep.subr.bf16.mxu0 %v469_v35  ;;  %v466_v36 = vsel %vm464_vm10, %v461_v33, %v429_v34 }
  0xa4   : > { %519 = vmatpush1.bf16.msra.mxu0 %v466_v36 }
  0xa7   : > { %807 = vmatmul.mubr.msk.bf16.vlgmr.msra.gmra.mxu0 %vm494_vm11, %v487_v42 }
 0x167   : > { %v538_v44 = vpop.f32.mrf.mxu0 }
 0x168   : > { %v539_v45 = vadd.f32 %v538_v44, %v492_v43 }
 0x169   : > { %v540_v46 = vpop.f32.mrf.mxu0 }
 0x16a   : > { %v1087_v47 = vmax.f32 %v539_v45, 0.0  ;;  %v541_v48 = vadd.f32 %v540_v46, %v492_v43 }
 0x16b   : > { %v542_v49 = vpop.f32.mrf.mxu0 }
 0x16c   : > { %609 = vrot.lane.b32.xlu0 %v1087_v47, %s881_s30  ;;  %619 = vrot.lane.b32.xlu1 %v1087_v47, %s879_s28  ;;  %v1093_v51 = vmax.f32 %v541_v48, 0.0 }
 0x16d   : > { %v543_v50 = vpop.f32.mrf.mxu0 }
 0x170   : > { %599 = vrot.lane.b32.xlu0 %v1087_v47, %s882_s7  ;;  %621 = vrot.lane.b32.xlu1 %v1093_v51, %s879_s28 }
 0x174   : > { %589 = vrot.lane.b32.xlu0 %v1087_v47, %s880_s29  ;;  %611 = vrot.lane.b32.xlu1 %v1093_v51, %s881_s30  ;;  %s803_s30 = sshll.u32 %s1206_s23, 3 }
 0x178   : > { %577 = vrot.lane.b32.xlu0 %v1087_v47, %s885_s10  ;;  %601 = vrot.lane.b32.xlu1 %v1093_v51, %s882_s7 }
 0x17c   : > { %567 = vrot.lane.b32.xlu0 %v1087_v47, %s883_s8  ;;  %591 = vrot.lane.b32.xlu1 %v1093_v51, %s880_s29 }
 0x180   : > { %557 = vrot.lane.b32.xlu0 %v1087_v47, %s884_s9  ;;  %579 = vrot.lane.b32.xlu1 %v1093_v51, %s885_s10 }
 0x184   : > { %547 = vrot.lane.b32.xlu0 %v1087_v47, %s886_s11  ;;  %569 = vrot.lane.b32.xlu1 %v1093_v51, %s883_s8 }
 0x188   : > { %681 = vperm.xlu0 %870, %v678_v52   ;;  %559 = vrot.lane.b32.xlu1 %v1093_v51, %s884_s9  ;;  %s253_s9 = scalar_lea.vmem %s1204_s6, %s803_s30 }
 0x18c   : > { %549 = vrot.lane.b32.xlu1 %v1093_v51, %s886_s11 }
 0x1de   : > { %v610_v53 = vpop.permute.xlu0 %609  ;;  %v620_v54 = vpop.permute.xlu1 %619 }
 0x1e2   : > { %v600_v55 = vpop.permute.xlu0 %599  ;;  %v622_v56 = vpop.permute.xlu1 %621 }
 0x1e3   : > { %v623_v57 = vsel %vm404_vm1, %v620_v54, %v622_v56  ;;  %v624_v58 = vsel %vm404_vm1, %v622_v56, %v620_v54 }
 0x1e4   : > { %v625_v61 = vmul.f32 %v1003_v38, %v623_v57  ;;  %v626_v62 = vmul.f32 %v998_v37, %v624_v58 }
 0x1e6   : > { %v590_v63 = vpop.permute.xlu0 %589  ;;  %v612_v1 = vpop.permute.xlu1 %611  ;;  %v628_v3 = vpack.c.bf16 %v626_v62, %v626_v62  ;;  %v627_v4 = vpack.c.bf16 %v625_v61, %v625_v61 }
 0x1e7   : > { %v613_v5 = vsel %vm385_vm2, %v610_v53, %v612_v1  ;;  %v614_v6 = vsel %vm385_vm2, %v612_v1, %v610_v53 }
 0x1e8   : > { %v615_v7 = vmul.f32 %v613_v5, %v993_v32  ;;  %v616_v8 = vmul.f32 %v614_v6, %v985_v27  ;;  %808 = vmatprep.subr.msk.bf16.mxu1 %vm459_vm9, %v628_v3  ;;  %v689_v38 = vsel %vm459_vm9, %v627_v4, 0 }
 0x1e9   : > { %701 = vmatpush1.bf16.msra.mxu1 %v689_v38 }
 0x1ea   : > { %v617_v37 = vpack.c.bf16 %v615_v7, %v615_v7  ;;  %v618_v9 = vpack.c.bf16 %v616_v8, %v616_v8  ;;  %v602_v11 = vpop.permute.xlu1 %601  ;;  %v578_v14 = vpop.permute.xlu0 %577 }
 0x1eb   : > { %v603_v12 = vsel %vm366_vm3, %v600_v55, %v602_v11  ;;  %v604_v13 = vsel %vm366_vm3, %v602_v11, %v600_v55 }
 0x1ec   : > { %v605_v15 = vmul.f32 %v603_v12, %v975_v21  ;;  %v606_v32 = vmul.f32 %v604_v13, %v977_v22  ;;  %v643_v27 = vrot.slane %v617_v37, 4  ;;  %v644_v59 = vrot.slane %v618_v9, 4 }
 0x1ee   : > { %v607_v2 = vpack.c.bf16 %v605_v15, %v605_v15  ;;  %v608_v16 = vpack.c.bf16 %v606_v32, %v606_v32  ;;  %v592_v17 = vpop.permute.xlu1 %591  ;;  %v568_v22 = vpop.permute.xlu0 %567 }
 0x1ef   : > { %v593_v18 = vsel %vm347_vm0, %v590_v63, %v592_v17  ;;  %v594_v23 = vsel %vm347_vm0, %v592_v17, %v590_v63 }
 0x1f0   : > { %v595_v41 = vmul.f32 %v593_v18, %v969_v19  ;;  %v596_v24 = vmul.f32 %v594_v23, %v971_v20  ;;  %v675_v28 = vsel %vm459_vm9, %v608_v16, %v644_v59  ;;  %v671_v21 = vsel %vm459_vm9, %v607_v2, %v643_v27 }
 0x1f1   : > { %702 = vmatprep.subr.bf16.mxu1 %v675_v28  ;;  %v588_v19 = vpack.c.bf16 %v1093_v51, %v1093_v51  ;;  %v587_v20 = vpack.c.bf16 %v1087_v47, %v1087_v47 }
 0x1f2   : > { %v597_v29 = vpack.c.bf16 %v595_v41, %v595_v41  ;;  %v598_v33 = vpack.c.bf16 %v596_v24, %v596_v24  ;;  %703 = vmatpush1.bf16.msra.mxu1 %v671_v21  ;;  %v580_v34 = vpop.permute.xlu1 %579  ;;  %v558_v47 = vpop.permute.xlu0 %557 }
 0x1f3   : > { %v581_v35 = vsel %vm328_vm7, %v578_v14, %v580_v34  ;;  %v582_v36 = vsel %vm328_vm7, %v580_v34, %v578_v14  ;;  %v677_v14 = vld [vmem:[%s1202_s4] sm:$0xf] }
 0x1f4   : > { %v639_v42 = vrot.slane %v597_v29, 4  ;;  %v640_v43 = vrot.slane %v598_v33, 4  ;;  %v583_v44 = vmul.f32 %v582_v36, %v1035_v0  ;;  %v584_v45 = vmul.f32 %v581_v35, %v1029_v60 }
 0x1f6   : > { %v585_v46 = vpack.c.bf16 %v583_v44, %v583_v44  ;;  %v586_v48 = vpack.c.bf16 %v584_v45, %v584_v45  ;;  %v570_v49 = vpop.permute.xlu1 %569  ;;  %v667_v50 = vsel %vm459_vm9, %v588_v19, %v640_v43  ;;  %v663_v52 = vsel %vm459_vm9, %v587_v20, %v639_v42  ;;  %v548_v3 = vpop.permute.xlu0 %547 }
 0x1f7   : > { %v571_v53 = vsel %vm309_vm5, %v568_v22, %v570_v49  ;;  %v572_v51 = vsel %vm309_vm5, %v570_v49, %v568_v22  ;;  %704 = vmatprep.subr.bf16.mxu1 %v667_v50 }
 0x1f8   : > { %v573_v54 = vmul.f32 %v572_v51, %v981_v25  ;;  %v574_v0 = vmul.f32 %v571_v53, %v983_v26  ;;  %705 = vmatpush1.bf16.msra.mxu1 %v663_v52  ;;  %v635_v60 = vrot.slane %v585_v46, 4  ;;  %v636_v55 = vrot.slane %v586_v48, 4 }
 0x1fa   : > { %v575_v56 = vpack.c.bf16 %v573_v54, %v573_v54  ;;  %v576_v57 = vpack.c.bf16 %v574_v0, %v574_v0  ;;  %v560_v58 = vpop.permute.xlu1 %559 }
 0x1fb   : > { %v561_v61 = vsel %vm290_vm6, %v558_v47, %v560_v58  ;;  %v562_v62 = vsel %vm290_vm6, %v560_v58, %v558_v47 }
 0x1fc   : > { %v563_v63 = vmul.f32 %v562_v62, %v989_v30  ;;  %v564_v1 = vmul.f32 %v561_v61, %v991_v31  ;;  %v659_v25 = vsel %vm459_vm9, %v576_v57, %v636_v55  ;;  %v655_v26 = vsel %vm459_vm9, %v575_v56, %v635_v60 }
 0x1fd   : > { %706 = vmatprep.subr.bf16.mxu1 %v659_v25 }
 0x1fe   : > { %v565_v4 = vpack.c.bf16 %v563_v63, %v563_v63  ;;  %v566_v5 = vpack.c.bf16 %v564_v1, %v564_v1  ;;  %v550_v6 = vpop.permute.xlu1 %549  ;;  %707 = vmatpush1.bf16.msra.mxu1 %v655_v26 }
 0x1ff   : > { %v551_v7 = vsel %vm271_vm8, %v548_v3, %v550_v6  ;;  %v552_v8 = vsel %vm271_vm8, %v550_v6, %v548_v3 }
 0x200   : > { %v553_v30 = vmul.f32 %v552_v8, %v1005_v39  ;;  %v554_v31 = vmul.f32 %v551_v7, %v1007_v40  ;;  %v631_v38 = vrot.slane %v565_v4, 4  ;;  %v632_v37 = vrot.slane %v566_v5, 4 }
 0x202   : > { %v555_v9 = vpack.c.bf16 %v553_v30, %v553_v30  ;;  %v556_v11 = vpack.c.bf16 %v554_v31, %v554_v31 }
 0x203   : > { %v682_v10 = vpop.permute.xlu0 %681 }
 0x204   : > { %v651_v12 = vsel %vm459_vm9, %v556_v11, %v632_v37  ;;  %v647_v13 = vsel %vm459_vm9, %v555_v9, %v631_v38 }
 0x205   : > { %708 = vmatprep.subr.bf16.mxu1 %v651_v12 }
 0x206   : > { %709 = vmatpush1.bf16.msra.mxu1 %v647_v13 }
 0x209   : > { %809 = vmatmul.mubr.msk.bf16.vlgmr.msra.gmra.mxu1 %vm684_vm12, %v677_v14 }
 0x2c9   : > { %v728_v39 = vpop.f32.mrf.mxu1 }
 0x2ca   : > { %v729_v40 = vadd.f32 %v728_v39, %v682_v10 }
 0x2cb   : > { %v730_v15 = vpop.f32.mrf.mxu1 }
 0x2cc   : > { %v735_v32 = vmax.f32 %v729_v40, 0.0  ;;  %v731_v27 = vadd.f32 %v730_v15, %v682_v10 }
 0x2cd   : > { %v732_v59 = vpop.f32.mrf.mxu1 }
 0x2ce   : > { %737 = vst [vmem:[%s253_s9] sm:$0xff] %v735_v32  ;;  %v736_v2 = vmax.f32 %v731_v27, 0.0 }
 0x2cf   : > { %v733_v16 = vpop.f32.mrf.mxu1 }
 0x2d0   : > { %738 = vst [vmem:[%s253_s9 + $0x8] sm:$0xff] %v736_v2 }
 0x2d1 PF: > { %s16_s21 = sadd.s32 1, %s877_s21  }
 0x2d2   : > { %p13_p4 = scmp.ge.s32.totalorder %s16_s21, 4  }
 0x2d4   :  { %15 = sbr.rel (!%p13_p4) target bundleno = 1 (0x1), region = 74 }

</bundles_post_ra>
